<compile_context>
chip_gen: v5e
topology: v5e:2x2
jax: 0.10.0
libtpu: 0.0.40
codegen_flags: <defaults>
</compile_context>

<pallas_src>
import jax
import jax.numpy as jnp
from jax.experimental import pallas as pl
from jax.experimental.pallas import tpu as pltpu

LANES = 128


def _round_up(x, m):
    return ((x + m - 1) // m) * m


def _sublanes_for_dtype(dtype):
    # Native sublane tile: 8 for 32-bit, 16 for 16-bit, 32 for 8-bit dtypes.
    itemsize = jnp.dtype(dtype).itemsize
    return max(8, 32 // max(1, itemsize))


def _laplace_kernel(coef_ref, x_ref, o_ref):
    # coef_ref: SMEM (4,) f32 scalar-prefetch ref -> a, b, c, x0
    a = coef_ref[0]
    neg_b = -coef_ref[1]
    c = coef_ref[2]
    x0 = coef_ref[3]
    x = x_ref[...].astype(jnp.float32)
    y = a * jnp.exp(neg_b * jnp.abs(x - x0)) + c
    o_ref[...] = y.astype(o_ref.dtype)


def _laplace_jnp(x, coef):
    a, b, c, x0 = coef[0], coef[1], coef[2], coef[3]
    y = a * jnp.exp(-b * jnp.abs(x.astype(jnp.float32) - x0)) + c
    return y.astype(x.dtype)


def fit_function_laplace(x, coefficients, *, block_bytes=4 << 20):
    """Apply y = a * exp(-b * |X - x0|) + c elementwise via Pallas.

    x:            any-shape float array (NCHW in the reference module).
    coefficients: (4,) array [a, b, c, x0].
    block_bytes:  target per-block byte size for the streaming tile.
    """
    orig_shape = x.shape
    orig_dtype = x.dtype
    itemsize = jnp.dtype(orig_dtype).itemsize
    coef = jnp.asarray(coefficients, jnp.float32)

    xf = x.reshape(-1)  # metadata-only for contiguous input
    n = xf.shape[0]

    n_main = (n // LANES) * LANES
    tail = n - n_main

    if n_main == 0:
        # Fewer than 128 elements: not worth a kernel launch.
        return _laplace_jnp(xf, coef).reshape(orig_shape)

    sub = _sublanes_for_dtype(orig_dtype)

    # Optionally widen the lane dim when the main length divides evenly.
    lanes = LANES
    for cand in (1024, 512, 256):
        if n_main % cand == 0 and n_main // cand >= sub:
            lanes = cand
            break
    m_rows = n_main // lanes

    # Target rows from the block byte budget, sublane-rounded.
    tr_target = max(sub, _round_up(max(1, block_bytes // (lanes * itemsize)), sub))
    if m_rows <= sub:
        tr = m_rows  # block equals full array dim (always legal)
    else:
        # Cap at ~half the rows so mid-sized inputs give >=2 grid steps
        # (keeps both v7x TensorCores busy under dimension_semantics parallel).
        tr = min(tr_target, _round_up((m_rows + 1) // 2, sub))
    grid = (pl.cdiv(m_rows, tr),)

    # Scoped-VMEM budget: 2 buffers x (in + out) blocks, plus slack. Raising
    # this matters on v5e (16 MiB default scoped limit) for 4 MiB blocks.
    vmem_needed = 4 * tr * lanes * itemsize + (2 << 20)
    vmem_limit = max(32 << 20, vmem_needed)

    cost = pl.CostEstimate(
        flops=5 * n_main,
        transcendentals=n_main,
        bytes_accessed=2 * n_main * itemsize,
    )

    x_main = xf[:n_main] if tail else xf
    x2d = x_main.reshape(m_rows, lanes)

    out2d = pl.pallas_call(
        _laplace_kernel,
        out_shape=jax.ShapeDtypeStruct((m_rows, lanes), orig_dtype),
        grid_spec=pltpu.PrefetchScalarGridSpec(
            num_scalar_prefetch=1,
            grid=grid,
            in_specs=[
                pl.BlockSpec((tr, lanes), lambda i, coef_ref: (i, 0)),
            ],
            out_specs=pl.BlockSpec((tr, lanes), lambda i, coef_ref: (i, 0)),
        ),
        compiler_params=pltpu.CompilerParams(
            dimension_semantics=("parallel",),
            vmem_limit_bytes=vmem_limit,
        ),
        cost_estimate=cost,
    )(coef, x2d)

    if tail:
        y_tail = _laplace_jnp(xf[n_main:], coef)
        out = jnp.concatenate([out2d.reshape(-1), y_tail]).reshape(orig_shape)
    else:
        out = out2d.reshape(orig_shape)
    return out


def reference_laplace(x, coefficients):
    coef = jnp.asarray(coefficients, jnp.float32)
    return _laplace_jnp(jnp.asarray(x), coef).reshape(x.shape)


if __name__ == "__main__":
    key = jax.random.PRNGKey(0)
    k_coef, k_x1, k_x2, k_x3 = jax.random.split(key, 4)

    # nn.Parameter init: Uniform(0, 0.1).sample((4,)) -> [a, b, c, x0]
    coefficients = jax.random.uniform(
        k_coef, (4,), dtype=jnp.float32, minval=0.0, maxval=0.1
    )

    # Main case: NCHW f32, flat length a multiple of 128 (pure reshape path).
    x = jax.random.uniform(
        k_x1, (2, 4, 16, 16), dtype=jnp.float32, minval=-2.0, maxval=2.0
    )
    y = jax.block_until_ready(fit_function_laplace(x, coefficients))
    y_ref = reference_laplace(x, coefficients)
    assert y.shape == x.shape and y.dtype == x.dtype
    assert jnp.allclose(y, y_ref, rtol=1e-5, atol=1e-5), "mismatch (aligned f32)"

    # Misaligned case: flat length 1155 -> main 1152 + 3-elem jnp tail, and a
    # partial edge row-block (verifies OOB-row masking on the last block).
    x_odd = jax.random.uniform(
        k_x2, (3, 5, 7, 11), dtype=jnp.float32, minval=-2.0, maxval=2.0
    )
    y_odd = jax.block_until_ready(fit_function_laplace(x_odd, coefficients))
    y_odd_ref = reference_laplace(x_odd, coefficients)
    assert y_odd.shape == x_odd.shape and y_odd.dtype == x_odd.dtype
    assert jnp.allclose(y_odd, y_odd_ref, rtol=1e-5, atol=1e-5), "mismatch (misaligned)"

    # bf16 case: exercises dtype-aware (16, 128) sublane rounding.
    x_bf16 = jax.random.uniform(
        k_x3, (2, 4, 16, 16), dtype=jnp.float32, minval=-2.0, maxval=2.0
    ).astype(jnp.bfloat16)
    y_bf16 = jax.block_until_ready(fit_function_laplace(x_bf16, coefficients))
    y_bf16_ref = reference_laplace(x_bf16, coefficients)
    assert y_bf16.shape == x_bf16.shape and y_bf16.dtype == x_bf16.dtype
    assert jnp.allclose(
        y_bf16.astype(jnp.float32), y_bf16_ref.astype(jnp.float32),
        rtol=2e-2, atol=2e-2,
    ), "mismatch (bf16)"

    print("KERNEL_OK")
</pallas_src>

<mosaic_0001>
module attributes {stable_mosaic.version = 11 : i64} {
  func.func @_laplace_kernel(%arg0: i32, %arg1: memref<4xf32, #tpu.memory_space<smem>>, %arg2: memref<8x256xf32, #tpu.memory_space<vmem>>, %arg3: memref<8x256xf32, #tpu.memory_space<vmem>>) attributes {dimension_semantics = [#tpu.dimension_semantics<parallel>], iteration_bounds = array<i64: 1>, scalar_prefetch = 1 : i64, scratch_operands = 0 : i64, tpu.core_type = #tpu.core_type<tc>, window_params = [{transform_indices = @transform_0, window_bounds = array<i64: 8, 256>}, {transform_indices = @transform_1, window_bounds = array<i64: 8, 256>}]} {
    %c0 = arith.constant 0 : index
    %0 = memref.load %arg1[%c0] : memref<4xf32, #tpu.memory_space<smem>>
    %c1 = arith.constant 1 : index
    %1 = memref.load %arg1[%c1] : memref<4xf32, #tpu.memory_space<smem>>
    %cst = arith.constant 0.000000e+00 : f32
    %2 = arith.subf %cst, %1 : f32
    %c2 = arith.constant 2 : index
    %3 = memref.load %arg1[%c2] : memref<4xf32, #tpu.memory_space<smem>>
    %c3 = arith.constant 3 : index
    %4 = memref.load %arg1[%c3] : memref<4xf32, #tpu.memory_space<smem>>
    %c0_0 = arith.constant 0 : index
    %c0_1 = arith.constant 0 : index
    %5 = vector.load %arg2[%c0_0, %c0_1] : memref<8x256xf32, #tpu.memory_space<vmem>>, vector<8x256xf32>
    %6 = vector.broadcast %4 : f32 to vector<8x256xf32>
    %7 = arith.subf %5, %6 : vector<8x256xf32>
    %8 = math.absf %7 : vector<8x256xf32>
    %9 = vector.broadcast %2 : f32 to vector<8x256xf32>
    %10 = arith.mulf %9, %8 : vector<8x256xf32>
    %11 = math.exp %10 : vector<8x256xf32>
    %12 = vector.broadcast %0 : f32 to vector<8x256xf32>
    %13 = arith.mulf %12, %11 : vector<8x256xf32>
    %14 = vector.broadcast %3 : f32 to vector<8x256xf32>
    %15 = arith.addf %13, %14 : vector<8x256xf32>
    %c0_2 = arith.constant 0 : index
    %c0_3 = arith.constant 0 : index
    %16 = vector.load %arg3[%c0_2, %c0_3] : memref<8x256xf32, #tpu.memory_space<vmem>>, vector<8x256xf32>
    tpu.vector_store %arg3[%c0_2, %c0_3], %15 {strides = array<i32>} : memref<8x256xf32, #tpu.memory_space<vmem>>, vector<8x256xf32>,
    return
  }
  func.func @transform_0(%arg0: i32, %arg1: memref<4xf32, #tpu.memory_space<smem>>) -> (i32, i32) {
    %c0_i32 = arith.constant 0 : i32
    %c0_i32_0 = arith.constant 0 : i32
    return %arg0, %c0_i32 : i32, i32
  }
  func.func @transform_1(%arg0: i32, %arg1: memref<4xf32, #tpu.memory_space<smem>>) -> (i32, i32) {
    %c0_i32 = arith.constant 0 : i32
    %c0_i32_0 = arith.constant 0 : i32
    return %arg0, %c0_i32 : i32, i32
  }
}

</mosaic_0001>

<bundles_post_ra>
// kernel: tpu_custom_call.1
= control target key start
LH: loop header
LB: loop body
LE: loop exit
PB: predicated region body
PF: predicated region fallthrough
CT: control target
= control target key end

     0   :  { %s152_s12 = smov [#allocation3]   ;;  %s179_s0 = inlined_call_operand.hbm [shape: f32[4], index: 0, kind: input, shape index: {}]   ;;  %s180_s1 = inlined_call_operand.hbm [shape: f32[8,256], index: 1, kind: input, shape index: {}]   ;;  %s181_s2 = inlined_call_operand.hbm [shape: f32[8,256], index: 2, kind: output, shape index: {}]  }
   0x1   :  { %s8_s11 = sshll.u32 %s179_s0, 4  ;;  %s9_s11 = int_to_ptr.hbm [resolvable:$true] %s8_s11 }
   0x2   :  { %11 = dma.hbm_to_smem %s9_s11, 16, %s152_s12, [#allocation2] }
   0x3   :  { %146 = dma.done.wait [#allocation2], 16 }
   0x4   :  { %147 = vsyncadd [#allocation2], 4294967280 }
   0x5   :  { %14 = sfence }
   0x6   :  { %15 = vsyncpa [#allocation5], 0 }
   0x7   :  { %16 = vsyncpa [#allocation6], 0  ;;  %s22_s15 = sshll.u32 %s180_s1, 4  ;;  %s153_s16 = smov [#allocation4]   ;;  %s23_s15 = int_to_ptr.hbm [resolvable:$true] %s22_s15 }
   0x8   :  { %s24_s17 = sshll.u32 %s153_s16, 4  ;;  %s25_s17 = int_to_ptr.vmem [resolvable:$true] %s24_s17 }
   0x9   :  { %27 = dma.hbm_to_vmem [thread:$0]  %s23_s15, 256, %s25_s17, [#allocation5]  }
   0xa   :  { %148 = dma.done.wait [#allocation5], 256  }
   0xb   :  { %149 = vsyncadd [#allocation5], 4294967040  ;;  %s76_s0 = sld [smem:[#allocation3 + $0x1]]  ;;  %v37_v0 = vld [vmem:[#allocation4] sm:$0xff]  ;;  %v38_v1 = vld [vmem:[#allocation4 + $0x8] sm:$0xff]  ;;  %s154_s21 = smov [#allocation7]  }
   0xc   :  { %s78_s18 = sld [smem:[#allocation3 + $0x3]]  ;;  %s64_s22 = sshll.u32 %s154_s21, 4  ;;  %s65_s22 = int_to_ptr.vmem [resolvable:$true] %s64_s22 }
   0xd   :  { %s32_s20 = sld [smem:[#allocation3]]  ;;  %s66_s25 = sshll.u32 %s181_s2, 4  ;;  %s67_s25 = int_to_ptr.hbm [resolvable:$true] %s66_s25 }
   0xe   :  { %s77_s1 = sld [smem:[#allocation3 + $0x2]] }
  0x11   :  { %s34_s19 = ssub.f32 0.0, %s76_s0 }
  0x12   :  { %v39_v2 = vstv %s78_s18 }
  0x13   :  { %v40_v3 = vsub.f32 %v37_v0, %v39_v2  ;;  %v41_v4 = vsub.f32 %v38_v1, %v39_v2  ;;  %v44_v5 = vstv %s34_s19  ;;  %v51_v12 = vstv %s32_s20 }
  0x14   :  { %v54_v14 = vstv %s77_s1 }
  0x15   :  { %v42_v6 = vand.u32 2147483647, %v40_v3  ;;  %v43_v7 = vand.u32 2147483647, %v41_v4 }
  0x17   :  { %v45_v8 = vmul.f32 %v44_v5, %v42_v6  ;;  %v46_v9 = vmul.f32 %v44_v5, %v43_v7 }
  0x19   :  { %v47_v10 = vmul.f32 1.442695, %v45_v8  ;;  %v49_v11 = vmul.f32 1.442695, %v46_v9 }
  0x1b   :  { %82 = vpow2.f32 %v47_v10 }
  0x1c   :  { %84 = vpow2.f32 %v49_v11 }
  0x21   :  { %v83_v13 = vpop.eup %82 }
  0x22   :  { %v85_v15 = vpop.eup %84  ;;  %v52_v16 = vmul.f32 %v83_v13, %v51_v12 }
  0x23   :  { %v53_v17 = vmul.f32 %v85_v15, %v51_v12 }
  0x24   :  { %v55_v18 = vadd.f32 %v54_v14, %v52_v16 }
  0x25   :  { %v56_v19 = vadd.f32 %v54_v14, %v53_v17 }
  0x26   :  { %57 = vst [vmem:[#allocation7] sm:$0xff] %v55_v18 }
  0x27   :  { %58 = vst [vmem:[#allocation7 + $0x8] sm:$0xff] %v56_v19 }
  0x28   :  { %69 = dma.vmem_to_hbm [thread:$0]  %s65_s22, 256, %s67_s25, [#allocation6]  }
  0x29   :  { %150 = dma.done.wait [#allocation6], 256  }
  0x2a   :  { %151 = vsyncadd [#allocation6], 4294967040 }
  0x2b   :  { %74 = vsyncpa [#allocation5], 1 }
  0x2c   :  { %75 = vsyncpa [#allocation6], 1 }

</bundles_post_ra>
